<compile_context>
chip_gen: v7x
topology: tpu7x:2x2x1
jax: 0.10.0
libtpu: 0.0.40
codegen_flags: <defaults>
</compile_context>

<pallas_src>
import jax
import jax.numpy as jnp
from jax.experimental import pallas as pl
from jax.experimental.pallas import tpu as pltpu


def _attention_reader_kernel(q_ref, k_ref, val_ref, mask_ref,
                             wq_ref, wk_ref, b_ref, vvec_ref,
                             ctx_ref, aw_ref):
    """One grid step = one batch row; fully fused additive attention."""
    q = q_ref[0]            # (1, d_q)
    k = k_ref[0]            # (L, d_v)
    vals = val_ref[0]       # (L, d_v)
    mask = mask_ref[0]      # (L, 1) float32, 1.0 == masked out

    # Split concat-Linear: query projection done once (not repeated L times),
    # bias folded into the query side.
    gq = jnp.dot(q, wq_ref[...], preferred_element_type=jnp.float32) + b_ref[...]   # (1, d_v)
    gk = jnp.dot(k, wk_ref[...], preferred_element_type=jnp.float32)                # (L, d_v)
    energy = jnp.tanh(gk + gq)                                                       # (L, d_v)

    # scores_t = v . energy_t  -> lane reduction (XLU), keeps d_v lane-dense upstream.
    scores = jnp.sum(energy * vvec_ref[...], axis=1, keepdims=True)                  # (L, 1)
    scores = jnp.where(mask > 0.5, jnp.float32(-1e12), scores)

    # softmax over L (sublane axis), max-subtracted exactly like F.softmax.
    m = jnp.max(scores, axis=0, keepdims=True)                                       # (1, 1)
    p = jnp.exp(scores - m)                                                          # (L, 1)
    denom = jnp.sum(p, axis=0, keepdims=True)                                        # (1, 1)
    alpha = p / denom                                                                # (L, 1)

    # context = sum_t alpha_t * V_t  -> (1, d_v) lane-dense store.
    ctx = jnp.sum(alpha * vals, axis=0, keepdims=True)                               # (1, d_v)

    ctx_ref[0] = ctx.astype(ctx_ref.dtype)
    aw_ref[0] = alpha.astype(aw_ref.dtype)


def attention_reader_forward(Q, K, V, attn_mask, params):
    """Forward pass of AttentionReader (eval-mode dropout).

    Q: (B, 1, d_q), K: (B, L, d_v), V: (B, L, d_v), attn_mask: (B, L) bool (True = mask).
    returns: context (B, d_v), attn_weights (B, 1, L)
    """
    B, _, d_q = Q.shape
    _, L, d_v = K.shape

    W = params["attn_weight"]            # (d_v, d_q + d_v), torch Linear layout (out, in)
    b = params["attn_bias"]              # (d_v,)
    v = params["v"]                      # (d_v,)

    # Pre-transpose so the kernel does x @ W; split the concat-Linear into Q/K halves.
    wq_t = W[:, :d_q].T.astype(jnp.float32)      # (d_q, d_v)
    wk_t = W[:, d_q:].T.astype(jnp.float32)      # (d_v, d_v)
    b2 = b.reshape(1, d_v).astype(jnp.float32)   # (1, d_v)
    v2 = v.reshape(1, d_v).astype(jnp.float32)   # (1, d_v)

    mask_f = attn_mask.astype(jnp.float32).reshape(B, L, 1)

    full2 = lambda bidx: (0, 0)

    ctx, aw = pl.pallas_call(
        _attention_reader_kernel,
        out_shape=(jax.ShapeDtypeStruct((B, 1, d_v), jnp.float32),
                   jax.ShapeDtypeStruct((B, L, 1), jnp.float32)),
        grid_spec=pltpu.PrefetchScalarGridSpec(
            num_scalar_prefetch=0,
            grid=(B,),
            in_specs=[
                pl.BlockSpec((1, 1, d_q), lambda bidx: (bidx, 0, 0)),   # Q
                pl.BlockSpec((1, L, d_v), lambda bidx: (bidx, 0, 0)),   # K
                pl.BlockSpec((1, L, d_v), lambda bidx: (bidx, 0, 0)),   # V
                pl.BlockSpec((1, L, 1), lambda bidx: (bidx, 0, 0)),     # mask
                pl.BlockSpec((d_q, d_v), full2),                        # W_q^T (resident)
                pl.BlockSpec((d_v, d_v), full2),                        # W_k^T (resident)
                pl.BlockSpec((1, d_v), full2),                          # bias
                pl.BlockSpec((1, d_v), full2),                          # v
            ],
            out_specs=[
                pl.BlockSpec((1, 1, d_v), lambda bidx: (bidx, 0, 0)),   # context
                pl.BlockSpec((1, L, 1), lambda bidx: (bidx, 0, 0)),     # attn weights
            ],
        ),
        compiler_params=pltpu.CompilerParams(
            dimension_semantics=("parallel",)),   # batch rows are independent
    )(Q.astype(jnp.float32), K.astype(jnp.float32), V.astype(jnp.float32),
      mask_f, wq_t, wk_t, b2, v2)

    context = ctx.reshape(B, d_v)          # == .squeeze(1)
    attn_weights = aw.reshape(B, 1, L)     # contiguous, layout-free reshape
    return context, attn_weights


# ----- pure-JAX reference (for correctness check) -----------------------------
def attention_reader_reference(Q, K, V, attn_mask, params):
    B, _, d_q = Q.shape
    _, L, d_v = K.shape
    W, b, v = params["attn_weight"], params["attn_bias"], params["v"]
    hi = jax.lax.Precision.HIGHEST

    q_state = jnp.tile(Q, (1, L, 1))                                   # (B, L, d_q)
    cat = jnp.concatenate([q_state, K], axis=2)                        # (B, L, d_q+d_v)
    energy = jnp.tanh(jnp.einsum('bli,oi->blo', cat, W, precision=hi) + b)
    scores = jnp.einsum('o,blo->bl', v, energy, precision=hi)          # (B, L)
    scores = jnp.where(attn_mask, -1e12, scores)
    weights = jax.nn.softmax(scores, axis=1)                           # (B, L)
    context = jnp.einsum('bl,bld->bd', weights, V, precision=hi)       # (B, d_v)
    return context, weights[:, None, :]


if __name__ == "__main__":
    B, L, d_q, d_v = 2, 8, 16, 32   # batch, key length, query dim, value/hidden dim

    key = jax.random.PRNGKey(0)
    ks = jax.random.split(key, 6)
    bound = 1.0 / (d_q + d_v) ** 0.5       # torch Linear default init range
    params = {
        "attn_weight": jax.random.uniform(ks[0], (d_v, d_q + d_v), jnp.float32,
                                          -bound, bound),
        "attn_bias": jax.random.uniform(ks[1], (d_v,), jnp.float32, -bound, bound),
        # torch: self.v ~ Normal(0, 1/sqrt(d_v))
        "v": jax.random.normal(ks[2], (d_v,), jnp.float32) / (d_v ** 0.5),
    }
    Q = jax.random.normal(ks[3], (B, 1, d_q), jnp.float32)
    K = jax.random.normal(ks[4], (B, L, d_v), jnp.float32)
    V = jax.random.normal(ks[5], (B, L, d_v), jnp.float32)
    lens = jnp.array([L, 5])                                   # variable key lengths
    attn_mask = jnp.arange(L)[None, :] >= lens[:, None]        # (B, L) bool, True = masked

    context, attn_weights = jax.block_until_ready(
        attention_reader_forward(Q, K, V, attn_mask, params))

    assert context.shape == (B, d_v), context.shape
    assert attn_weights.shape == (B, 1, L), attn_weights.shape

    ref_ctx, ref_aw = attention_reader_reference(Q, K, V, attn_mask, params)
    assert jnp.allclose(context, ref_ctx, atol=1e-3, rtol=1e-3)
    assert jnp.allclose(attn_weights, ref_aw, atol=1e-3, rtol=1e-3)
    assert jnp.allclose(jnp.sum(attn_weights, axis=-1), 1.0, atol=1e-5)

    print("KERNEL_OK")
</pallas_src>

<mosaic_0001>
module attributes {stable_mosaic.version = 11 : i64} {
  func.func @_attention_reader_kernel(%arg0: i32, %arg1: memref<1x1x16xf32, #tpu.memory_space<vmem>>, %arg2: memref<1x8x32xf32, #tpu.memory_space<vmem>>, %arg3: memref<1x8x32xf32, #tpu.memory_space<vmem>>, %arg4: memref<1x8x1xf32, #tpu.memory_space<vmem>>, %arg5: memref<16x32xf32, #tpu.memory_space<vmem>>, %arg6: memref<32x32xf32, #tpu.memory_space<vmem>>, %arg7: memref<1x32xf32, #tpu.memory_space<vmem>>, %arg8: memref<1x32xf32, #tpu.memory_space<vmem>>, %arg9: memref<1x1x32xf32, #tpu.memory_space<vmem>>, %arg10: memref<1x8x1xf32, #tpu.memory_space<vmem>>) attributes {dimension_semantics = [#tpu.dimension_semantics<parallel>], iteration_bounds = array<i64: 2>, scalar_prefetch = 0 : i64, scratch_operands = 0 : i64, tpu.core_type = #tpu.core_type<tc>, window_params = [{transform_indices = @transform_0, window_bounds = array<i64: 1, 1, 16>}, {transform_indices = @transform_1, window_bounds = array<i64: 1, 8, 32>}, {transform_indices = @transform_2, window_bounds = array<i64: 1, 8, 32>}, {transform_indices = @transform_3, window_bounds = array<i64: 1, 8, 1>}, {pipeline_mode = #tpu.pipeline_mode<synchronous>, transform_indices = @transform_4, window_bounds = array<i64: 16, 32>}, {pipeline_mode = #tpu.pipeline_mode<synchronous>, transform_indices = @transform_5, window_bounds = array<i64: 32, 32>}, {pipeline_mode = #tpu.pipeline_mode<synchronous>, transform_indices = @transform_6, window_bounds = array<i64: 1, 32>}, {pipeline_mode = #tpu.pipeline_mode<synchronous>, transform_indices = @transform_7, window_bounds = array<i64: 1, 32>}, {transform_indices = @transform_8, window_bounds = array<i64: 1, 1, 32>}, {transform_indices = @transform_9, window_bounds = array<i64: 1, 8, 1>}]} {
    %c0 = arith.constant 0 : index
    %c0_0 = arith.constant 0 : index
    %c0_1 = arith.constant 0 : index
    %0 = vector.load %arg1[%c0, %c0_0, %c0_1] : memref<1x1x16xf32, #tpu.memory_space<vmem>>, vector<1x1x16xf32>
    %1 = vector.shape_cast %0 : vector<1x1x16xf32> to vector<1x16xf32>
    %c0_2 = arith.constant 0 : index
    %c0_3 = arith.constant 0 : index
    %c0_4 = arith.constant 0 : index
    %2 = vector.load %arg2[%c0_2, %c0_3, %c0_4] : memref<1x8x32xf32, #tpu.memory_space<vmem>>, vector<1x8x32xf32>
    %3 = vector.shape_cast %2 : vector<1x8x32xf32> to vector<8x32xf32>
    %c0_5 = arith.constant 0 : index
    %c0_6 = arith.constant 0 : index
    %c0_7 = arith.constant 0 : index
    %4 = vector.load %arg3[%c0_5, %c0_6, %c0_7] : memref<1x8x32xf32, #tpu.memory_space<vmem>>, vector<1x8x32xf32>
    %5 = vector.shape_cast %4 : vector<1x8x32xf32> to vector<8x32xf32>
    %c0_8 = arith.constant 0 : index
    %c0_9 = arith.constant 0 : index
    %c0_10 = arith.constant 0 : index
    %6 = vector.load %arg4[%c0_8, %c0_9, %c0_10] : memref<1x8x1xf32, #tpu.memory_space<vmem>>, vector<1x8x1xf32>
    %7 = vector.shape_cast %6 : vector<1x8x1xf32> to vector<8x1xf32>
    %c0_11 = arith.constant 0 : index
    %c0_12 = arith.constant 0 : index
    %8 = vector.load %arg5[%c0_11, %c0_12] : memref<16x32xf32, #tpu.memory_space<vmem>>, vector<16x32xf32>
    %cst = arith.constant dense<0.000000e+00> : vector<1x32xf32>
    %9 = tpu.matmul %1, %8, %cst {dimension_numbers = #tpu.dot_dimension_numbers<[1], [0], [0], [1], [0, 0, 1, 1], [], []>} : vector<1x16xf32>, vector<16x32xf32>, vector<1x32xf32> -> vector<1x32xf32>
    %c0_13 = arith.constant 0 : index
    %c0_14 = arith.constant 0 : index
    %10 = vector.load %arg7[%c0_13, %c0_14] : memref<1x32xf32, #tpu.memory_space<vmem>>, vector<1x32xf32>
    %11 = arith.addf %9, %10 : vector<1x32xf32>
    %c0_15 = arith.constant 0 : index
    %c0_16 = arith.constant 0 : index
    %12 = vector.load %arg6[%c0_15, %c0_16] : memref<32x32xf32, #tpu.memory_space<vmem>>, vector<32x32xf32>
    %cst_17 = arith.constant dense<0.000000e+00> : vector<8x32xf32>
    %13 = tpu.matmul %3, %12, %cst_17 {dimension_numbers = #tpu.dot_dimension_numbers<[1], [0], [0], [1], [0, 0, 1, 1], [], []>} : vector<8x32xf32>, vector<32x32xf32>, vector<8x32xf32> -> vector<8x32xf32>
    %14 = vector.broadcast %11 : vector<1x32xf32> to vector<8x32xf32>
    %15 = arith.addf %13, %14 : vector<8x32xf32>
    %16 = math.tanh %15 : vector<8x32xf32>
    %c0_18 = arith.constant 0 : index
    %c0_19 = arith.constant 0 : index
    %17 = vector.load %arg8[%c0_18, %c0_19] : memref<1x32xf32, #tpu.memory_space<vmem>>, vector<1x32xf32>
    %18 = vector.broadcast %17 : vector<1x32xf32> to vector<8x32xf32>
    %19 = arith.mulf %16, %18 : vector<8x32xf32>
    %cst_20 = arith.constant dense<0.000000e+00> : vector<8xf32>
    %20 = vector.multi_reduction <add>, %19, %cst_20 [1] : vector<8x32xf32> to vector<8xf32>
    %21 = vector.shape_cast %20 : vector<8xf32> to vector<8x1xf32>
    %cst_21 = arith.constant 5.000000e-01 : f32
    %22 = vector.broadcast %cst_21 : f32 to vector<8x1xf32>
    %23 = arith.cmpf ogt, %7, %22 : vector<8x1xf32>
    %cst_22 = arith.constant -9.99999995E+11 : f32
    %24 = vector.broadcast %cst_22 : f32 to vector<8x1xf32>
    %25 = arith.select %23, %24, %21 : vector<8x1xi1>, vector<8x1xf32>
    %cst_23 = arith.constant dense<0xFF800000> : vector<1xf32>
    %26 = vector.multi_reduction <maximumf>, %25, %cst_23 [0] : vector<8x1xf32> to vector<1xf32>
    %27 = vector.shape_cast %26 : vector<1xf32> to vector<1x1xf32>
    %28 = vector.broadcast %27 : vector<1x1xf32> to vector<8x1xf32>
    %29 = arith.subf %25, %28 : vector<8x1xf32>
    %30 = math.exp %29 : vector<8x1xf32>
    %cst_24 = arith.constant dense<0.000000e+00> : vector<1xf32>
    %31 = vector.multi_reduction <add>, %30, %cst_24 [0] : vector<8x1xf32> to vector<1xf32>
    %32 = vector.shape_cast %31 : vector<1xf32> to vector<1x1xf32>
    %33 = vector.broadcast %32 : vector<1x1xf32> to vector<8x1xf32>
    %34 = arith.divf %30, %33 : vector<8x1xf32>
    %35 = vector.broadcast %34 : vector<8x1xf32> to vector<8x32xf32>
    %36 = arith.mulf %35, %5 : vector<8x32xf32>
    %cst_25 = arith.constant dense<0.000000e+00> : vector<32xf32>
    %37 = vector.multi_reduction <add>, %36, %cst_25 [0] : vector<8x32xf32> to vector<32xf32>
    %38 = vector.shape_cast %37 : vector<32xf32> to vector<1x32xf32>
    %c0_26 = arith.constant 0 : index
    %c0_27 = arith.constant 0 : index
    %c0_28 = arith.constant 0 : index
    %39 = vector.load %arg9[%c0_26, %c0_27, %c0_28] : memref<1x1x32xf32, #tpu.memory_space<vmem>>, vector<1x1x32xf32>
    %40 = vector.shape_cast %39 : vector<1x1x32xf32> to vector<1x32xf32>
    %41 = vector.shape_cast %38 : vector<1x32xf32> to vector<1x1x32xf32>
    tpu.vector_store %arg9[%c0_26, %c0_27, %c0_28], %41 {strides = array<i32>} : memref<1x1x32xf32, #tpu.memory_space<vmem>>, vector<1x1x32xf32>,
    %c0_29 = arith.constant 0 : index
    %c0_30 = arith.constant 0 : index
    %c0_31 = arith.constant 0 : index
    %42 = vector.load %arg10[%c0_29, %c0_30, %c0_31] : memref<1x8x1xf32, #tpu.memory_space<vmem>>, vector<1x8x1xf32>
    %43 = vector.shape_cast %42 : vector<1x8x1xf32> to vector<8x1xf32>
    %44 = vector.shape_cast %34 : vector<8x1xf32> to vector<1x8x1xf32>
    tpu.vector_store %arg10[%c0_29, %c0_30, %c0_31], %44 {strides = array<i32>} : memref<1x8x1xf32, #tpu.memory_space<vmem>>, vector<1x8x1xf32>,
    return
  }
  func.func @transform_0(%arg0: i32) -> (i32, i32, i32) {
    %c0_i32 = arith.constant 0 : i32
    %c0_i32_0 = arith.constant 0 : i32
    %c0_i32_1 = arith.constant 0 : i32
    return %arg0, %c0_i32, %c0_i32_0 : i32, i32, i32
  }
  func.func @transform_1(%arg0: i32) -> (i32, i32, i32) {
    %c0_i32 = arith.constant 0 : i32
    %c0_i32_0 = arith.constant 0 : i32
    %c0_i32_1 = arith.constant 0 : i32
    return %arg0, %c0_i32, %c0_i32_0 : i32, i32, i32
  }
  func.func @transform_2(%arg0: i32) -> (i32, i32, i32) {
    %c0_i32 = arith.constant 0 : i32
    %c0_i32_0 = arith.constant 0 : i32
    %c0_i32_1 = arith.constant 0 : i32
    return %arg0, %c0_i32, %c0_i32_0 : i32, i32, i32
  }
  func.func @transform_3(%arg0: i32) -> (i32, i32, i32) {
    %c0_i32 = arith.constant 0 : i32
    %c0_i32_0 = arith.constant 0 : i32
    %c0_i32_1 = arith.constant 0 : i32
    return %arg0, %c0_i32, %c0_i32_0 : i32, i32, i32
  }
  func.func @transform_4(%arg0: i32) -> (i32, i32) {
    %c0_i32 = arith.constant 0 : i32
    %c0_i32_0 = arith.constant 0 : i32
    %c0_i32_1 = arith.constant 0 : i32
    return %c0_i32, %c0_i32_0 : i32, i32
  }
  func.func @transform_5(%arg0: i32) -> (i32, i32) {
    %c0_i32 = arith.constant 0 : i32
    %c0_i32_0 = arith.constant 0 : i32
    %c0_i32_1 = arith.constant 0 : i32
    return %c0_i32, %c0_i32_0 : i32, i32
  }
  func.func @transform_6(%arg0: i32) -> (i32, i32) {
    %c0_i32 = arith.constant 0 : i32
    %c0_i32_0 = arith.constant 0 : i32
    %c0_i32_1 = arith.constant 0 : i32
    return %c0_i32, %c0_i32_0 : i32, i32
  }
  func.func @transform_7(%arg0: i32) -> (i32, i32) {
    %c0_i32 = arith.constant 0 : i32
    %c0_i32_0 = arith.constant 0 : i32
    %c0_i32_1 = arith.constant 0 : i32
    return %c0_i32, %c0_i32_0 : i32, i32
  }
  func.func @transform_8(%arg0: i32) -> (i32, i32, i32) {
    %c0_i32 = arith.constant 0 : i32
    %c0_i32_0 = arith.constant 0 : i32
    %c0_i32_1 = arith.constant 0 : i32
    return %arg0, %c0_i32, %c0_i32_0 : i32, i32, i32
  }
  func.func @transform_9(%arg0: i32) -> (i32, i32, i32) {
    %c0_i32 = arith.constant 0 : i32
    %c0_i32_0 = arith.constant 0 : i32
    %c0_i32_1 = arith.constant 0 : i32
    return %arg0, %c0_i32, %c0_i32_0 : i32, i32, i32
  }
}

</mosaic_0001>

<bundles_post_ra>
// kernel: tpu_custom_call.1
= control target key start
LH: loop header
LB: loop body
LE: loop exit
PB: predicated region body
PF: predicated region fallthrough
CT: control target
= control target key end

     0   :  { %s1446_s0 = inlined_call_operand.vmem [shape: f32[2,1,16], index: 0, kind: input, shape index: {}]   ;;  %s1447_s1 = inlined_call_operand.hbm [shape: f32[2,8,32], index: 1, kind: input, shape index: {}]   ;;  %s1448_s2 = inlined_call_operand.hbm [shape: f32[2,8,32], index: 2, kind: input, shape index: {}]   ;;  %s1449_s3 = inlined_call_operand.vmem [shape: f32[2,8,1], index: 3, kind: input, shape index: {}]   ;;  %s1450_s4 = inlined_call_operand.hbm [shape: f32[16,32], index: 4, kind: input, shape index: {}]   ;;  %s1451_s5 = inlined_call_operand.vmem [shape: f32[32,32], index: 5, kind: input, shape index: {}]   ;;  %s1452_s6 = inlined_call_operand.vmem [shape: f32[1,32], index: 6, kind: input, shape index: {}]   ;;  %s1453_s7 = inlined_call_operand.vmem [shape: f32[1,32], index: 7, kind: input, shape index: {}]   ;;  %s1454_s8 = inlined_call_operand.hbm [shape: f32[2,1,32], index: 8, kind: output, shape index: {0}]   ;;  %s1455_s9 = inlined_call_operand.vmem [shape: f32[2,8,1], index: 9, kind: output, shape index: {1}]  }
   0x1   :  { %1465 = sst [smem:[#allocation18_spill]] %s1450_s4 }
   0x2   :  { %15 = vsyncpa [#allocation3], 0 }
   0x3   :  { %17 = vsyncpa [#allocation3 + $0x1], 0 }
   0x4   :  { %18 = vsyncpa [#allocation6], 0 }
   0x5   :  { %20 = vsyncpa [#allocation6 + $0x1], 0 }
   0x6   :  { %21 = vsyncpa [#allocation4], 0 }
   0x7   :  { %23 = vsyncpa [#allocation4 + $0x1], 0  ;;  %s1170_s30 = smov 0   ;;  %s1172_s10 = smov 0  }
   0x8   :  { %s1174_s11 = smov 0   ;;  %s1176_s12 = smov 0  }
   0x9 LB: > { %1466 = sst [smem:[#allocation13_spill]] %s1096_s30  ;;  %s1191_s13 = sadd.s32 4294967295, %s1108_s12   ;;  %s1108_s12 = sphi %s1176_s12, %s1488_s12   ;;  %s1104_s11 = sphi %s1174_s11, %s1490_s11   ;;  %s1100_s10 = sphi %s1172_s10, %s1492_s10   ;;  %s1096_s30 = sphi %s1170_s30, %s1491_s30  }
   0xa   : > { %1467 = sst [smem:[#allocation14_spill]] %s1104_s11  ;;  %s816_s14 = sadd.s32 4294967294, %s1108_s12  }
   0xb   : > { %p75_p0 = scmp.ne.s32.totalorder %s1100_s10, %s1096_s30  ;;  %p1456_p1 = scmp.eq.s32.totalorder %s1191_s13, 0 }
   0xc   : > { %p241_p3 = scmp.eq.s32.totalorder %s816_s14, 1  ;;  %p817_p5 = scmp.ge.s32.totalorder %s1108_s12, 1 }
   0xd   : > { %p1200_p4 = por %p1456_p1, %p75_p0  ;;  %p274_p7 = scmp.lt.s32.totalorder %s1108_s12, 3 }
   0xe   : > { %p1205_p6 = por %p241_p3, %p75_p0  ;;  %s1110_s18 = smov [#allocation7]  }
   0xf   : > { %s1468_s15 = scalar_select %p1200_p4, 1, 0 }
  0x10   : > { %s1469_s16 = scalar_select %p1205_p6, 1, 0 }
  0x11   : > { %p1210_p8 = pnand %p817_p5, %p274_p7  ;;  %s286_s19 = sshll.u32 %s1110_s18, 4  ;;  %s1214_s19 = int_to_ptr.vmem [resolvable:$true] %s286_s19 }
  0x12   : > { %1470 = sst [smem:[#allocation15_spill]] %s1469_s16  ;;  %s1226_s21 = sadd.s32 1, %s1108_s12  }
  0x13   : > { %s1471_s17 = scalar_select %p1210_p8, 1, 0 }
  0x14   : > { %p881_p9 = pneg %p1210_p8  ;;  %1473 = sst [smem:[#allocation16_spill]] %s1226_s21 }
  0x15   : > { %s62_s22 = sadd.s32 1, %s1104_s11  ;;  %s59_s23 = ssub.s32 %s1108_s12, %s1226_s21 }
  0x16   : > { %p1221_p11 = pnand %p881_p9, %p1456_p1  ;;  %s1474_s4 = sld [smem:[#allocation18_spill]] }
  0x18   : > { %p948_p13 = pneg %p1221_p11 }
  0x1c   : > { %s946_s26 = scalar_lea.hbm %s1474_s4, 256 }
  0x1d   : > { %p947_p12 = scmp.ne.s32.totalorder %s1474_s4, %s946_s26  ;;  %p953_p5 = scmp.lt.u32.totalorder %s946_s26, %s1474_s4 }
  0x1f   : > { %p949_p0 = pnand %p948_p13, %p947_p12 }
  0x21   : > { %p950_p3 = pneg %p949_p0 }
  0x23   : > { %p955_p7 = pnand %p953_p5, %p950_p3 }
  0x25   : > { %958 = shalt.err (!%p955_p7)
}
  0x26   : > { %s959_s18 = scalar_lea.vmem %s1214_s19, 256  ;;  %p967_p2 = scmp.lt.s32.totalorder %s1214_s19, %s1214_s19 }
  0x27   : > { %p960_p9 = scmp.ne.s32.totalorder %s1214_s19, %s959_s18  ;;  %p968_p6 = scmp.lt.s32.totalorder %s959_s18, %s959_s18 }
  0x29   : > { %p962_p10 = pnand %p960_p9, %p948_p13  ;;  %p969_p4 = por %p968_p6, %p967_p2 }
  0x2b   : > { %p963_p1 = pneg %p962_p10 }
  0x2d   : > { %p970_p8 = pnand %p969_p4, %p963_p1 }
  0x2f   : > { %973 = shalt.err (!%p970_p8)
}
  0x30   : > { %s1111_s24 = smov 128   ;;  %s1112_s25 = smov 8  }
  0x31   : > { %884 = dma.hbm_to_vmem [thread:$0]  (!%p1221_p11), %s1474_s4, 256, %s1214_s19, [#allocation6], %s1111_s24, %s1111_s24, %s1112_s25  }
  0x32   : > { %p60_p2 = scmp.eq.s32.totalorder %s59_s23, 0  ;;  %p69_p1 = scmp.ne.s32.totalorder %s1104_s11, %s1100_s10 }
  0x33   : > { %p70_p4 = scmp.eq.s32.totalorder %s1108_s12, 0  ;;  %p897_p6 = scmp.lt.s32.totalorder %s1108_s12, 2 }
  0x34   : > { %s1257_s28 = scalar_select %p60_p2, %s1104_s11, %s62_s22  }
  0x35   : > { %p71_p8 = por %p70_p4, %p69_p1  ;;  %p1476_p10 = scmp.eq.s32.totalorder %s1191_s13, 1 }
  0x36   : > { %1475 = sst [smem:[#allocation17_spill]] %s1257_s28  ;;  %s315_s14 = sand.u32 1, %s1104_s11  }
  0x37   : > { %p1261_p12 = por %p1476_p10, %p69_p1  ;;  %s821_s18 = sshll.u32 %s1108_s12, 7 }
  0x38   : > { %s1267_s21 = sshll.u32 %s315_s14, 3  ;;  %s1272_s19 = scalar_lea.hbm %s1447_s1, %s821_s18 }
  0x39   : > { %s1477_s29 = scalar_select %p1261_p12, 1, 0 }
  0x3a   : > { %s319_s22 = scalar_lea.vmem [#allocation2], %s1267_s21  ;;  %p1275_p11 = pnand %p897_p6, %p71_p8 }
  0x3b   : > { %s326_s23 = sshll.u32 %s319_s22, 4  ;;  %s1284_s16 = scalar_lea.hbm %s1448_s2, %s821_s18  ;;  %s1279_s23 = int_to_ptr.vmem [resolvable:$true] %s326_s23 }
  0x3c   : > { %s316_s27 = scalar_lea.sflag [#allocation3], %s315_s14  ;;  %s974_s20 = scalar_lea.hbm %s1272_s19, 128 }
  0x3d   : > { %p975_p13 = scmp.ne.s32.totalorder %s1272_s19, %s974_s20  ;;  %p976_p0 = pneg %p1275_p11 }
  0x3e   : > { %s979_s28 = scalar_lea.hbm %s1447_s1, 256  ;;  %p980_p7 = scmp.lt.u32.totalorder %s1272_s19, %s1447_s1 }
  0x3f   : > { %p977_p3 = pnand %p976_p0, %p975_p13  ;;  %p981_p9 = scmp.lt.u32.totalorder %s979_s28, %s974_s20 }
  0x40   : > { %p983_p1 = scmp.lt.u32.totalorder %s974_s20, %s1272_s19 }
  0x41   : > { %p978_p5 = pneg %p977_p3  ;;  %p982_p2 = por %p981_p9, %p980_p7 }
  0x43   : > { %p984_p4 = por %p983_p1, %p982_p2 }
  0x45   : > { %p985_p6 = pnand %p984_p4, %p978_p5 }
  0x47   : > { %988 = shalt.err (!%p985_p6)
}
  0x48   : > { %s989_s14 = scalar_lea.vmem %s1279_s23, 128  ;;  %s1113_s4 = smov [#allocation2]  }
  0x49   : > { %p990_p8 = scmp.ne.s32.totalorder %s1279_s23, %s989_s14  ;;  %s994_s18 = sshll.u32 %s1113_s4, 4  ;;  %s995_s18 = int_to_ptr.vmem [resolvable:$false] %s994_s18 }
  0x4a   : > { %s996_s30 = scalar_lea.vmem %s995_s18, 256  ;;  %p997_p3 = scmp.lt.s32.totalorder %s1279_s23, %s995_s18 }
  0x4b   : > { %p992_p10 = pnand %p990_p8, %p976_p0  ;;  %p998_p7 = scmp.lt.s32.totalorder %s996_s30, %s989_s14 }
  0x4d   : > { %p993_p13 = pneg %p992_p10  ;;  %p999_p9 = por %p998_p7, %p997_p3 }
  0x4f   : > { %p1000_p2 = pnand %p999_p9, %p993_p13 }
  0x51   : > { %1003 = shalt.err (!%p1000_p2)
}
  0x52   : > { %888 = dma.hbm_to_vmem [thread:$0]  (!%p1275_p11), %s1272_s19, 128, %s1279_s23, %s316_s27  }
  0x53   : > { %s333_s11 = sand.u32 1, %s1108_s12   ;;  %s337_s28 = scalar_lea.vmem [#allocation5], %s1267_s21 }
  0x54   : > { %s344_s25 = sshll.u32 %s337_s28, 4  ;;  %s334_s26 = scalar_lea.sflag [#allocation6], %s333_s11  ;;  %s345_s25 = int_to_ptr.vmem [resolvable:$true] %s344_s25 }
  0x55   : > { %s1004_s20 = scalar_lea.hbm %s1284_s16, 128  ;;  %s1009_s4 = scalar_lea.hbm %s1448_s2, 256 }
  0x56   : > { %p1005_p5 = scmp.ne.s32.totalorder %s1284_s16, %s1004_s20  ;;  %p1010_p6 = scmp.lt.u32.totalorder %s1284_s16, %s1448_s2 }
  0x57   : > { %p1011_p8 = scmp.lt.u32.totalorder %s1009_s4, %s1004_s20  ;;  %p1013_p13 = scmp.lt.u32.totalorder %s1004_s20, %s1284_s16 }
  0x58   : > { %p1007_p1 = pnand %p1005_p5, %p976_p0 }
  0x59   : > { %p1012_p10 = por %p1011_p8, %p1010_p6 }
  0x5a   : > { %p1008_p4 = pneg %p1007_p1 }
  0x5b   : > { %p1014_p3 = por %p1013_p13, %p1012_p10 }
  0x5d   : > { %p1015_p7 = pnand %p1014_p3, %p1008_p4 }
  0x5f   : > { %1018 = shalt.err (!%p1015_p7)
}
  0x60   : > { %s1019_s21 = scalar_lea.vmem %s345_s25, 128  ;;  %s1114_s19 = smov [#allocation5]  }
  0x61   : > { %p1020_p9 = scmp.ne.s32.totalorder %s345_s25, %s1019_s21  ;;  %s1024_s23 = sshll.u32 %s1114_s19, 4  ;;  %s1025_s23 = int_to_ptr.vmem [resolvable:$false] %s1024_s23 }
  0x62   : > { %s1026_s27 = scalar_lea.vmem %s1025_s23, 256  ;;  %p1027_p1 = scmp.lt.s32.totalorder %s345_s25, %s1025_s23 }
  0x63   : > { %p1022_p2 = pnand %p1020_p9, %p976_p0  ;;  %p1028_p12 = scmp.lt.s32.totalorder %s1026_s27, %s1019_s21 }
  0x65   : > { %p1023_p5 = pneg %p1022_p2  ;;  %p1029_p6 = por %p1028_p12, %p1027_p1 }
  0x67   : > { %p1030_p8 = pnand %p1029_p6, %p1023_p5 }
  0x69   : > { %1033 = shalt.err (!%p1030_p8)
}
  0x6a   : > { %891 = dma.hbm_to_vmem [thread:$0]  (!%p1275_p11), %s1284_s16, 128, %s345_s25, %s334_s26  }
  0x6b   : > { %p1479_p4 = scmp.ne.s32.totalorder %s1471_s17, 0 }
  0x6c   : > { %s1335_s11 = sand.u32 (!%p1479_p4), 1, %s1100_s10   ;;  %p1480_p12 = scmp.ne.s32.totalorder (!%p1479_p4), %s1468_s15, 0 }
  0x6d   : > { %360 = sbr.rel (%p1479_p4) target bundleno = 716 (0x2cc), region = 52  ;;  %s825_s28 = sshll.u32 (!%p1479_p4), %s1335_s11, 3 }
  0x6e   : > { %s363_s20 = scalar_lea.sflag (!%p1479_p4), [#allocation3], %s1335_s11  ;;  %s1339_s22 = scalar_lea.vmem (!%p1479_p4), [#allocation2], %s825_s28 }
  0x74   : > { %1079 = dma.done.wait (%p1480_p12), %s363_s20, 128  }
  0x75   : > { %1081 = vsyncadd (%p1480_p12), %s363_s20, 4294967168  ;;  %s371_s24 = sand.u32 1, %s1191_s13   ;;  %s1346_s16 = scalar_lea.vmem [#allocation5], %s825_s28 }
  0x76   : > { %s372_s17 = scalar_lea.sflag [#allocation6], %s371_s24 }
  0x77   : > { %1083 = dma.done.wait (%p1480_p12), %s372_s17, 128  }
  0x78   : > { %1085 = vsyncadd (%p1480_p12), %s372_s17, 4294967168  ;;  %p1481_p11 = scmp.eq.s32.totalorder %s1191_s13, 0 }
  0x7a   : > { %1087 = dma.done.wait (%p1481_p11), [#allocation6], 256   ;;  %p1482_p0 = pmov %p1481_p11 }
  0x7b   : > { %p429_p10 = scmp.lt.s32.totalorder %s1191_s13, 1  ;;  %v1115_v0 = vmov 0.0|0.0   ;;  %vm1116_vm0 = vmmov 0   ;;  %v1117_v1 = vmov 0.0   ;;  %v444_v2 = vld [vmem:[#allocation7] sm:$0xff]  ;;  %v445_v3 = vld [vmem:[#allocation7 + $0x8] sm:$0xff]  ;;  %v525_v13 = vlaneseq }
  0x7c   : > { %1089 = vsyncadd (%p1482_p0), [#allocation6], 4294967040  ;;  %862 = vmatprep.subr.bf16.mxu0 %v1115_v0  ;;  %865 = vmatprep.subr.bf16.mxu1 %v1115_v0  ;;  %v521_v4 = vld [vmem:[%s1451_s5] sm:$0xff]  ;;  %v863_v5 = vpack.c.bf16 %v445_v3, %v444_v2  ;;  %v522_v6 = vld [vmem:[%s1451_s5 + $0x8] sm:$0xff]  ;;  %vm447_vm1 = vcmask 130048   ;;  %vm529_vm2 = vcmask 261120  }
  0x7d   : > { %848 = vmatprep.mubr.msk.f32.mxu0 %vm1116_vm0, %v1117_v1  ;;  %859 = vmatprep.mubr.msk.f32.mxu1 %vm1116_vm0, %v1117_v1  ;;  %s1358_s25 = scalar_select %p429_p10, %s1191_s13, 1  ;;  %v523_v7 = vld [vmem:[%s1451_s5 + $0x10] sm:$0xff]  ;;  %v866_v8 = vpack.c.bf16 %v522_v6, %v521_v4  ;;  %v524_v9 = vld [vmem:[%s1451_s5 + $0x18] sm:$0xff]  ;;  %v441_v12 = vld [vmem:[%s1339_s22] sm:$0xff]  ;;  %v526_v14 = vshrl.u32 %v525_v13, 7  ;;  %v1118_v28 = vmov 0  }
  0x7e   : > { %864 = vmatpush3.bf16.msra.mxu0 %v863_v5  ;;  %v869_v11 = vpack.c.bf16 %v524_v9, %v523_v7  ;;  %v446_v15 = vld [vmem:[%s1452_s6] sm:$0x1]  ;;  %939 = vset.pattern.permute.xlu0 %v1118_v28  ;;  %vm617_vm4 = vcmask 7168   ;;  %v442_v51 = vld [vmem:[%s1346_s16] sm:$0xff]  ;;  %s833_s21 = sshll.u32 %s1191_s13, 4  ;;  %s422_s19 = scalar_lea.vmem [#allocation8], %s1335_s11 }
  0x7f   : > { %s431_s18 = scalar_lea.vmem %s1446_s0, %s1358_s25  ;;  %867 = vmatpush3.bf16.msra.mxu1 %v866_v8  ;;  %v527_v16 = vsub.s32 0, %v526_v14  ;;  %v832_v24 = vld [vmem:[%s1453_s7] ss:$0 sm:$0xff]  ;;  %s828_s15 = sshll.u32 %s1358_s25, 3  ;;  %vm650_vm5 = vcmask 253952  }
  0x80   : > { %v440_v10 = vld [vmem:[%s431_s18] sm:$0x1]  ;;  %868 = vmatprep.subr.bf16.mxu1 %v1115_v0  ;;  %s435_s4 = scalar_lea.vmem %s1449_s3, %s828_s15  ;;  %s439_s30 = scalar_lea.vmem %s1455_s9, %s828_s15 }
  0x81   : > { %849 = vmatmul.mubr.msk.f32.vlgmr.msra.gmra.mrb[0].mxu0 %vm447_vm1, %v440_v10  ;;  %v443_v29 = vld [vmem:[%s435_s4] sm:$0xff]  ;;  %s670_s23 = sshll.u32 %s422_s19, 4  ;;  %s1402_s16 = scalar_lea.hbm %s1454_s8, %s833_s21  ;;  %s1404_s23 = int_to_ptr.vmem [resolvable:$true] %s670_s23 }
  0x82   : > { %vm615_vm3 = vcmp.gt.f32.partialorder %v443_v29, 0.5  ;;  %s654_s20 = scalar_lea.sflag [#allocation4], %s1335_s11  ;;  %s1034_s24 = scalar_lea.vmem %s1404_s23, 16 }
  0x83   : > { %870 = vmatpush3.bf16.msra.mxu1 %v869_v11  ;;  %p1035_p13 = scmp.ne.s32.totalorder %s1404_s23, %s1034_s24  ;;  %p1483_p3 = scmp.ne.s32.totalorder %s1477_s29, 0 }
  0x84   : > { %s1119_s13 = smov [#allocation8]  }
  0x85   : > { %p1036_p7 = pnand %p1035_p13, %p1483_p3  ;;  %s1038_s22 = sshll.u32 %s1119_s13, 4  ;;  %s1039_s22 = int_to_ptr.vmem [resolvable:$false] %s1038_s22 }
  0x86   : > { %860 = vmatmul.mubr.msk.f32.vlgmr.msra.gmra.mrb[0].mxu1 %vm529_vm2, %v441_v12  ;;  %s1040_s17 = scalar_lea.vmem %s1039_s22, 32  ;;  %p1041_p2 = scmp.lt.s32.totalorder %s1404_s23, %s1039_s22 }
  0x87   : > { %p1037_p9 = pneg %p1036_p7  ;;  %p1042_p5 = scmp.lt.s32.totalorder %s1040_s17, %s1034_s24 }
  0x89   : > { %p1043_p1 = por %p1042_p5, %p1041_p2 }
  0x8b   : > { %p1044_p6 = pnand %p1043_p1, %p1037_p9 }
 0x154   : > { %v517_v17 = vpop.f32.mrb[0].mxu0 }
 0x155   : > { %v518_v18 = vadd.f32 %v517_v17, %v446_v15  ;;  %v850_v19 = vpop.f32.mrb[1].mxu0 }
 0x157   : > { %v528_v20 = vrot.slane %v518_v18, %v527_v16 }
 0x159   : > { %v599_v21 = vpop.f32.mrb[0].mxu1 }
 0x15a   : > { %v600_v22 = vadd.f32 %v599_v21, %v528_v20  ;;  %v861_v23 = vpop.f32.mrb[1].mxu1 }
 0x15c   : > { %940 = vtanh.f32 %v600_v22 }
 0x166   : > { %v941_v25 = vpop.eup %940 }
 0x167   : > { %v611_v26 = vmul.f32 %v941_v25, %v832_v24 }
 0x169   : > { %v612_v27 = vsel %vm529_vm2, %v611_v26, 0.0 }
 0x16a   : > { %613 = vadd.xlane.f32.xlu0 %v612_v27 }
 0x1f7   : > { %v614_v30 = vpop.xlane.xlu0 %613 }
 0x1f8   : > { %v616_v31 = vsel %vm615_vm3, -1e+12, %v614_v30 }
 0x1f9   : > { %v618_v32 = vsel %vm617_vm4, %v616_v31, -inf }
 0x1fa   : > { %v619_v33 = vrot.slane %v618_v32, 4 }
 0x1fc   : > { %v620_v34 = vmax.f32 %v618_v32, %v619_v33 }
 0x1fe   : > { %v621_v35 = vrot.slane %v620_v34, 2 }
 0x200   : > { %v622_v36 = vmax.f32 %v620_v34, %v621_v35 }
 0x202   : > { %v623_v37 = vrot.slane %v622_v36, 1 }
 0x204   : > { %v624_v38 = vmax.f32 %v622_v36, %v623_v37 }
 0x206   : > { %v625_v39 = vsub.f32 %v616_v31, %v624_v38 }
 0x208   : > { %v626_v40 = vmul.f32 1.442695, %v625_v39 }
 0x20a   : > { %942 = vpow2.f32 %v626_v40 }
 0x214   : > { %v943_v41 = vpop.eup %942 }
 0x215   : > { %v628_v42 = vsel %vm617_vm4, %v943_v41, 0.0 }
 0x216   : > { %v629_v43 = vrot.slane %v628_v42, 4 }
 0x218   : > { %v630_v44 = vadd.f32 %v629_v43, %v628_v42 }
 0x21a   : > { %v631_v45 = vrot.slane %v630_v44, 2 }
 0x21c   : > { %v632_v46 = vadd.f32 %v631_v45, %v630_v44 }
 0x21e   : > { %v633_v47 = vrot.slane %v632_v46, 1 }
 0x220   : > { %v634_v48 = vadd.f32 %v633_v47, %v632_v46 }
 0x222   : > { %944 = vrcp.f32 %v634_v48 }
 0x22c   : > { %v945_v49 = vpop.eup %944 }
 0x22d   : > { %v636_v50 = vmul.f32 %v945_v49, %v943_v41 }
 0x22f   : > { %639 = vperm.xlu0 %939, %v636_v50   ;;  %652 = vst.msk [vmem:[%s439_s30] sm:$0xff] %vm617_vm4, %v636_v50 }
 0x2ae   : > { %v640_v52 = vpop.permute.xlu0 %639 }
 0x2af   : > { %v642_v53 = vmul.f32 %v640_v52, %v442_v51 }
 0x2b1   : > { %v643_v54 = vsel %vm529_vm2, %v642_v53, 0.0 }
 0x2b2   : > { %v644_v55 = vrot.slane %v643_v54, 4 }
 0x2b4   : > { %v645_v56 = vadd.f32 %v644_v55, %v643_v54 }
 0x2b6   : > { %v646_v57 = vrot.slane %v645_v56, 2 }
 0x2b8   : > { %v647_v58 = vadd.f32 %v646_v57, %v645_v56 }
 0x2ba   : > { %v648_v59 = vrot.slane %v647_v58, 1 }
 0x2bc   : > { %v649_v60 = vadd.f32 %v648_v59, %v647_v58 }
 0x2be   : > { %651 = vst.msk [vmem:[%s422_s19] sm:$0x1] %vm650_vm5, %v649_v60 }
 0x2bf   : > { %1047 = shalt.err (!%p1044_p6)
}
 0x2c0   : > { %s1048_s11 = scalar_lea.hbm %s1402_s16, 16  ;;  %s1052_s14 = scalar_lea.hbm %s1454_s8, 32 }
 0x2c1   : > { %p1049_p8 = scmp.ne.s32.totalorder %s1402_s16, %s1048_s11  ;;  %p1053_p11 = scmp.lt.u32.totalorder %s1402_s16, %s1454_s8 }
 0x2c2   : > { %p1054_p0 = scmp.lt.u32.totalorder %s1052_s14, %s1048_s11  ;;  %p1056_p13 = scmp.lt.u32.totalorder %s1048_s11, %s1402_s16 }
 0x2c3   : > { %p1050_p4 = pnand %p1049_p8, %p1483_p3 }
 0x2c4   : > { %p1055_p10 = por %p1054_p0, %p1053_p11 }
 0x2c5   : > { %p1051_p12 = pneg %p1050_p4 }
 0x2c6   : > { %p1057_p7 = por %p1056_p13, %p1055_p10 }
 0x2c8   : > { %p1058_p9 = pnand %p1057_p7, %p1051_p12 }
 0x2ca   : > { %1061 = shalt.err (!%p1058_p9)
}
 0x2cb   : > { %879 = dma.vmem_to_hbm [thread:$0]  (%p1483_p3), %s1404_s23, 16, %s1402_s16, %s654_s20  }
 0x2cc PF: > { %s1484_s18 = sld [smem:[#allocation13_spill]]  ;;  %s1485_s30 = sld [smem:[#allocation15_spill]] }
 0x2cd   : > { %p1487_p5 = scmp.ge.s32.totalorder %s1108_s12, 2 }
 0x2d2   : > { %s685_s21 = sand.u32 1, %s1484_s18   ;;  %p1486_p2 = scmp.ne.s32.totalorder %s1485_s30, 0 }
 0x2d3   : > { %s686_s19 = scalar_lea.sflag [#allocation4], %s685_s21 }
 0x2d4   : > { %p893_p1 = pnand %p1487_p5, %p1486_p2 }
 0x2d6   : > { %1091 = dma.done.wait (!%p893_p1), %s686_s19, 16  }
 0x2d7   : > { %1093 = vsyncadd (!%p893_p1), %s686_s19, 4294967280  ;;  %s1488_s12 = sld [smem:[#allocation16_spill]]  ;;  %s1489_s27 = sld [smem:[#allocation14_spill]] }
 0x2d8   : > { %s1490_s11 = sld [smem:[#allocation17_spill]]  ;;  %s1491_s30 = smov %s1100_s10 }
 0x2dd   : > { %p26_p6 = scmp.ge.s32.totalorder %s1488_s12, 4   ;;  %s1492_s10 = smov %s1489_s27 }
 0x2df   :  { %28 = sbr.rel (!%p26_p6) target bundleno = 9 (0x9), region = 132 }
 0x2e6   :  { %697 = vsyncpa [#allocation3], 1 }
 0x2e7   :  { %699 = vsyncpa [#allocation3 + $0x1], 1 }
 0x2e8   :  { %700 = vsyncpa [#allocation6], 1 }
 0x2e9   :  { %702 = vsyncpa [#allocation6 + $0x1], 1 }
 0x2ea   :  { %703 = vsyncpa [#allocation4], 1 }
 0x2eb   :  { %705 = vsyncpa [#allocation4 + $0x1], 1 }

</bundles_post_ra>
